<compile_context>
chip_gen: v5e
topology: v5e:2x2
jax: 0.10.0
libtpu: 0.0.40
codegen_flags: <defaults>
</compile_context>

<pallas_src>
import jax
import jax.numpy as jnp
from jax.experimental import pallas as pl
from jax.experimental.pallas import tpu as pltpu


def actnorm_kernel(x_ref, scale_ref, loc_ref, o_ref):
    # x_ref: (bm, HW); scale_ref/loc_ref: (bm, 1) -> broadcast along lanes.
    o_ref[...] = scale_ref[...] * (x_ref[...] + loc_ref[...])


def actnorm2d_forward(x, scale, loc):
    """x: (N, C, H, W); scale, loc: (1, C, 1, 1). Returns scale * (x + loc)."""
    N, C, H, W = x.shape
    HW = H * W
    rows = N * C

    # Flatten to a lane/sublane-dense 2-D problem.
    x2 = x.reshape(rows, HW)
    scale_rows = jnp.tile(scale.reshape(C, 1), (N, 1))   # (N*C, 1)
    loc_rows = jnp.tile(loc.reshape(C, 1), (N, 1))       # (N*C, 1)

    # Row-block sizing: ~2 MiB of x per block (mem-bound sweet spot), multiple of 8
    # rows; with double-buffered input + output that's ~8 MiB VMEM, well under the
    # 32 MiB scoped default on every generation (incl. v7x's 64 MiB physical VMEM).
    target_bytes = 2 * 1024 * 1024
    bytes_per_row = HW * x.dtype.itemsize
    max_rows = max(8, (target_bytes // max(bytes_per_row, 1)) // 8 * 8)
    if rows <= max_rows:
        bm = rows                      # full extent: always a legal block dim
    else:
        bm = max_rows                  # multiple of 8; Pallas masks the ragged tail
    grid = (pl.cdiv(rows, bm),)

    # NOTE: input_output_aliases={0: 0} could reuse x's HBM buffer for the output
    # when x is donated inside a larger jitted model; omitted here because the
    # test reuses x afterwards.
    out2 = pl.pallas_call(
        actnorm_kernel,
        out_shape=jax.ShapeDtypeStruct((rows, HW), x.dtype),
        grid=grid,
        in_specs=[
            pl.BlockSpec((bm, HW), lambda i: (i, 0)),
            pl.BlockSpec((bm, 1), lambda i: (i, 0)),
            pl.BlockSpec((bm, 1), lambda i: (i, 0)),
        ],
        out_specs=pl.BlockSpec((bm, HW), lambda i: (i, 0)),
        compiler_params=pltpu.CompilerParams(
            dimension_semantics=("parallel",),
        ),
    )(x2, scale_rows, loc_rows)

    return out2.reshape(N, C, H, W)


if __name__ == "__main__":
    key = jax.random.PRNGKey(0)
    kx, ks, kl = jax.random.split(key, 3)

    N, C, H, W = 2, 4, 16, 16
    x = jax.random.normal(kx, (N, C, H, W), dtype=jnp.float32)

    # Module init is zeros/ones; use deterministic non-trivial values so the
    # per-channel broadcast path is actually exercised.
    scale = 1.0 + 0.1 * jax.random.normal(ks, (1, C, 1, 1), dtype=jnp.float32)
    loc = 0.1 * jax.random.normal(kl, (1, C, 1, 1), dtype=jnp.float32)

    out = actnorm2d_forward(x, scale, loc)
    out = jax.block_until_ready(out)

    ref = scale * (x + loc)
    assert out.shape == (N, C, H, W)
    assert jnp.allclose(out, ref, atol=1e-6, rtol=1e-6), "mismatch vs reference"

    print("KERNEL_OK")
</pallas_src>

<mosaic_0001>
module attributes {stable_mosaic.version = 11 : i64} {
  func.func @actnorm_kernel(%arg0: i32, %arg1: memref<8x256xf32, #tpu.memory_space<vmem>>, %arg2: memref<8x1xf32, #tpu.memory_space<vmem>>, %arg3: memref<8x1xf32, #tpu.memory_space<vmem>>, %arg4: memref<8x256xf32, #tpu.memory_space<vmem>>) attributes {dimension_semantics = [#tpu.dimension_semantics<parallel>], iteration_bounds = array<i64: 1>, scalar_prefetch = 0 : i64, scratch_operands = 0 : i64, tpu.core_type = #tpu.core_type<tc>, window_params = [{transform_indices = @transform_0, window_bounds = array<i64: 8, 256>}, {transform_indices = @transform_1, window_bounds = array<i64: 8, 1>}, {transform_indices = @transform_2, window_bounds = array<i64: 8, 1>}, {transform_indices = @transform_3, window_bounds = array<i64: 8, 256>}]} {
    %c0 = arith.constant 0 : index
    %c0_0 = arith.constant 0 : index
    %0 = vector.load %arg2[%c0, %c0_0] : memref<8x1xf32, #tpu.memory_space<vmem>>, vector<8x1xf32>
    %c0_1 = arith.constant 0 : index
    %c0_2 = arith.constant 0 : index
    %1 = vector.load %arg1[%c0_1, %c0_2] : memref<8x256xf32, #tpu.memory_space<vmem>>, vector<8x256xf32>
    %c0_3 = arith.constant 0 : index
    %c0_4 = arith.constant 0 : index
    %2 = vector.load %arg3[%c0_3, %c0_4] : memref<8x1xf32, #tpu.memory_space<vmem>>, vector<8x1xf32>
    %3 = vector.broadcast %2 : vector<8x1xf32> to vector<8x256xf32>
    %4 = arith.addf %1, %3 : vector<8x256xf32>
    %5 = vector.broadcast %0 : vector<8x1xf32> to vector<8x256xf32>
    %6 = arith.mulf %5, %4 : vector<8x256xf32>
    %c0_5 = arith.constant 0 : index
    %c0_6 = arith.constant 0 : index
    %7 = vector.load %arg4[%c0_5, %c0_6] : memref<8x256xf32, #tpu.memory_space<vmem>>, vector<8x256xf32>
    tpu.vector_store %arg4[%c0_5, %c0_6], %6 {strides = array<i32>} : memref<8x256xf32, #tpu.memory_space<vmem>>, vector<8x256xf32>,
    return
  }
  func.func @transform_0(%arg0: i32) -> (i32, i32) {
    %c0_i32 = arith.constant 0 : i32
    %c0_i32_0 = arith.constant 0 : i32
    return %arg0, %c0_i32 : i32, i32
  }
  func.func @transform_1(%arg0: i32) -> (i32, i32) {
    %c0_i32 = arith.constant 0 : i32
    %c0_i32_0 = arith.constant 0 : i32
    return %arg0, %c0_i32 : i32, i32
  }
  func.func @transform_2(%arg0: i32) -> (i32, i32) {
    %c0_i32 = arith.constant 0 : i32
    %c0_i32_0 = arith.constant 0 : i32
    return %arg0, %c0_i32 : i32, i32
  }
  func.func @transform_3(%arg0: i32) -> (i32, i32) {
    %c0_i32 = arith.constant 0 : i32
    %c0_i32_0 = arith.constant 0 : i32
    return %arg0, %c0_i32 : i32, i32
  }
}

</mosaic_0001>

<bundles_post_ra>
// kernel: tpu_custom_call.1
= control target key start
LH: loop header
LB: loop body
LE: loop exit
PB: predicated region body
PF: predicated region fallthrough
CT: control target
= control target key end

     0   :  { %s117_s0 = inlined_call_operand.vmem [shape: f32[8,256], index: 0, kind: input, shape index: {}]   ;;  %s118_s1 = inlined_call_operand.vmem [shape: f32[8,1], index: 1, kind: input, shape index: {}]   ;;  %s119_s2 = inlined_call_operand.vmem [shape: f32[8,1], index: 2, kind: input, shape index: {}]   ;;  %s120_s3 = inlined_call_operand.hbm [shape: f32[8,256], index: 3, kind: output, shape index: {}]  }
   0x1   :  { %v18_v0 = vld [vmem:[%s119_s2] sm:$0xff] }
   0x2   :  { %8 = vsyncpa [#allocation3], 0  ;;  %v80_v1 = vmov 0   ;;  %v15_v2 = vld [vmem:[%s118_s1] sm:$0xff]  ;;  %v17_v5 = vld [vmem:[%s117_s0 + $0x8] sm:$0xff]  ;;  %s81_s2 = smov [#allocation2]  }
   0x3   :  { %53 = vset.pattern.permute.xlu0 %v80_v1  ;;  %v16_v4 = vld [vmem:[%s117_s0] sm:$0xff]  ;;  %s40_s20 = sshll.u32 %s81_s2, 4  ;;  %s42_s23 = sshll.u32 %s120_s3, 4  ;;  %s41_s20 = int_to_ptr.vmem [resolvable:$true] %s40_s20  ;;  %s43_s23 = int_to_ptr.hbm [resolvable:$true] %s42_s23 }
   0x4   :  { %21 = vperm.xlu0 %53, %v18_v0  }
   0xc   :  { %28 = vperm.xlu0 %53, %v15_v2  }
  0x76   :  { %v22_v3 = vpop.permute.xlu0 %21 }
  0x77   :  { %v24_v6 = vadd.f32 %v22_v3, %v16_v4  ;;  %v25_v7 = vadd.f32 %v22_v3, %v17_v5 }
  0x7e   :  { %v29_v8 = vpop.permute.xlu0 %28 }
  0x7f   :  { %v31_v9 = vmul.f32 %v29_v8, %v24_v6  ;;  %v32_v10 = vmul.f32 %v29_v8, %v25_v7 }
  0x81   :  { %33 = vst [vmem:[#allocation2] sm:$0xff] %v31_v9 }
  0x82   :  { %34 = vst [vmem:[#allocation2 + $0x8] sm:$0xff] %v32_v10 }
  0x83   :  { %45 = dma.vmem_to_hbm [thread:$0]  %s41_s20, 256, %s43_s23, [#allocation3]  }
  0x84   :  { %78 = dma.done.wait [#allocation3], 256  }
  0x85   :  { %79 = vsyncadd [#allocation3], 4294967040 }
  0x86   :  { %50 = vsyncpa [#allocation3], 1 }

</bundles_post_ra>
